<compile_context>
chip_gen: v5e
topology: v5e:2x2
jax: 0.10.0
libtpu: 0.0.40
codegen_flags: <defaults>
</compile_context>

<pallas_src>
import functools
import math

import jax
import jax.numpy as jnp
from jax.experimental import pallas as pl
from jax.experimental.pallas import tpu as pltpu


# ----------------------------- Pallas kernel ---------------------------------

def upconv_phase_kernel(x_ref, w_ref, o_ref, *, row_stride, n_row_steps, activation):
    """Polyphase (upsample x2 + reflect-pad + 3x3 conv) kernel.

    x_ref: (1, (H+2)*Wr, 3*Cin)  flattened edge-padded pre-upsample image; the 3 column
                                 shifts of the 3x3 stencil are pre-packed into channels.
    w_ref: (3, 3*Cin, 4*Cout)    polyphase-packed weights (row-shift, K, phase*Cout).
    o_ref: (1, Tc, 4*Cout)       this grid step's chunk of phase-packed output rows.
    """
    tc = o_ref.shape[1]
    if n_row_steps == 1:
        base = 0                                      # static offsets only
    else:
        base = pl.multiple_of(pl.program_id(1) * tc, 8)

    acc = jnp.zeros((tc, o_ref.shape[2]), dtype=jnp.float32)
    # The 3 row shifts of the stencil are contiguous, sublane-aligned slices of the
    # VMEM-resident input block -> no duplicated tap arrays in HBM.
    for dy in range(3):
        tap = x_ref[0, pl.ds(base + dy * row_stride, tc), :]
        acc = acc + jnp.dot(tap, w_ref[dy], preferred_element_type=jnp.float32)

    if activation == "relu":
        acc = jnp.maximum(acc, 0.0)
    else:                                             # "tanh" (final layer)
        acc = jnp.tanh(acc)
    o_ref[0] = acc.astype(o_ref.dtype)


# --------------------------- weight preparation -------------------------------

# For output row 2m+p of the upsampled conv, original kernel row-tap a lands on
# edge-padded pre-upsample row m+d with the grouping below (identical for columns).
_PHASE_MIX = [[[1, 0, 0], [0, 1, 1], [0, 0, 0]],      # phase 0: d=0 <- w0, d=1 <- w1+w2
              [[0, 0, 0], [1, 1, 0], [0, 0, 1]]]      # phase 1: d=1 <- w0+w1, d=2 <- w2


def pack_phase_weights(w):
    """(3, 3, Cin, Cout) HWIO conv weights -> (3, 3*Cin, 4*Cout) polyphase-packed."""
    cin, cout = w.shape[2], w.shape[3]
    mix = jnp.asarray(_PHASE_MIX, dtype=w.dtype)                   # (2, 3, 3) [p, d, a]
    wf = jnp.einsum('pda,qeb,abio->deipqo', mix, mix, w,
                    precision=jax.lax.Precision.HIGHEST)           # (3,3,Cin,2,2,Cout)
    return wf.reshape(3, 3 * cin, 4 * cout)


# ------------------------------ layer wrapper ---------------------------------

def upconv_block(x, w3, *, final):
    """x: (N, H, W, Cin) NHWC; w3: (3, 3*Cin, 4*Cout) packed. Returns (N, 2H, 2W, Cout)."""
    n, h, wd, cin = x.shape
    cout = w3.shape[-1] // 4

    # Edge pad of the pre-upsample image == reflect pad of the x2-nearest-upsampled image.
    xe = jnp.pad(x, ((0, 0), (1, 1), (1, 1), (0, 0)), mode="edge")     # (N, H+2, W+2, Cin)

    # Pack the 3 column shifts into channels -> matmul K = 3*Cin, only ~3x the (small)
    # pre-upsample activation is read from HBM (vs 9x full-res taps + upsampled before).
    x3 = jnp.concatenate([xe[:, :, dx:dx + wd, :] for dx in range(3)], axis=-1)

    # Pad width to a multiple of 8 so every in-kernel row slice is sublane-aligned.
    wr = max(8, ((wd + 7) // 8) * 8)
    if wr != wd:
        x3 = jnp.pad(x3, ((0, 0), (0, 0), (0, wr - wd), (0, 0)), mode="edge")

    xf = x3.reshape(n, (h + 2) * wr, 3 * cin).astype(jnp.bfloat16)

    total = h * wr                                    # phase-packed output rows per batch
    n_row_steps = 2 if total >= 4096 else 1           # >=2 parallel steps on big layers
    tc = total // n_row_steps
    out_dtype = jnp.float32 if final else jnp.bfloat16

    kern = functools.partial(upconv_phase_kernel, row_stride=wr,
                             n_row_steps=n_row_steps,
                             activation="tanh" if final else "relu")

    outp = pl.pallas_call(
        kern,
        out_shape=jax.ShapeDtypeStruct((n, total, 4 * cout), out_dtype),
        grid_spec=pltpu.PrefetchScalarGridSpec(
            num_scalar_prefetch=0,
            grid=(n, n_row_steps),
            in_specs=[
                # Whole per-batch flattened image (<= ~0.8 MB bf16 on the largest layer).
                pl.BlockSpec((1, (h + 2) * wr, 3 * cin), lambda i, r: (i, 0, 0)),
                pl.BlockSpec((3, 3 * cin, 4 * cout), lambda i, r: (0, 0, 0)),
            ],
            out_specs=pl.BlockSpec((1, tc, 4 * cout), lambda i, r: (i, r, 0)),
        ),
        compiler_params=pltpu.CompilerParams(
            dimension_semantics=("parallel", "parallel"),
        ),
    )(xf, w3)

    # Un-pack phases: (N, H*Wr, 4*Cout) -> (N, 2H, 2W, Cout).
    out = outp.reshape(n, h, wr, 2, 2, cout)[:, :, :wd]
    out = out.transpose(0, 1, 3, 2, 4, 5).reshape(n, 2 * h, 2 * wd, cout)
    return out


# -------------------------------- Generator -----------------------------------

class GeneratorPallas:
    """JAX/Pallas port of the PyTorch Generator (7 UpConvBlocks, 2x2 -> 256x256)."""

    def __init__(self, key, input_dim=30, num_classes=2, im_chan=1, hidden_dim=8):
        assert (input_dim + num_classes) % 4 == 0
        self.input_dim = input_dim
        self.num_classes = num_classes
        c0 = (input_dim + num_classes) // 4
        chans = [c0,
                 hidden_dim * 8, hidden_dim * 4, hidden_dim * 4,
                 hidden_dim * 2, hidden_dim * 2, hidden_dim, im_chan]
        self.packed_weights = []
        for i in range(7):
            cin, cout = chans[i], chans[i + 1]
            key, sub = jax.random.split(key)
            # TODO(synk): deterministic conv-scaled normal init; load real torch weights
            # (Conv2d default is kaiming-uniform) for parity with a trained checkpoint.
            w = jax.random.normal(sub, (3, 3, cin, cout), jnp.float32)
            w = w * (1.0 / math.sqrt(9.0 * cin))
            self.packed_weights.append(pack_phase_weights(w).astype(jnp.bfloat16))

    def __call__(self, labels, noise_key):
        n = labels.shape[0]
        noise = jax.random.normal(noise_key, (n, self.input_dim), jnp.float32)
        one_hot = jax.nn.one_hot(labels, self.num_classes, dtype=jnp.float32)
        x = jnp.concatenate([noise, one_hot], axis=1)            # (n, input_dim + nc)
        c0 = (self.input_dim + self.num_classes) // 4
        x = x.reshape(n, c0, 2, 2)                               # NCHW, same as torch .view
        x = jnp.transpose(x, (0, 2, 3, 1)).astype(jnp.bfloat16)  # -> NHWC for the kernels
        for i, w3 in enumerate(self.packed_weights):
            x = upconv_block(x, w3, final=(i == 6))
        return jnp.transpose(x, (0, 3, 1, 2))                    # back to NCHW (float32)


# ------------------------------ pure-JAX reference -----------------------------

def _reference_upconv(x, w, final):
    """nearest-upsample x2, reflect-pad 1, 3x3 conv (cross-correlation), activation."""
    up = jnp.repeat(jnp.repeat(x, 2, axis=1), 2, axis=2)
    xp = jnp.pad(up, ((0, 0), (1, 1), (1, 1), (0, 0)), mode="reflect")
    out = jax.lax.conv_general_dilated(
        xp, w, window_strides=(1, 1), padding="VALID",
        dimension_numbers=("NHWC", "HWIO", "NHWC"),
        precision=jax.lax.Precision.HIGHEST)
    return jnp.tanh(out) if final else jnp.maximum(out, 0.0)


# ---------------------------------- driver -------------------------------------

if __name__ == "__main__":
    key = jax.random.PRNGKey(0)
    k_params, k_noise, k_chk_x, k_chk_w = jax.random.split(key, 4)

    # --- correctness spot-check of one block against the pure-JAX reference ---
    cin, cout, hh, ww = 16, 8, 8, 8
    x_chk = 0.5 * jax.random.normal(k_chk_x, (1, hh, ww, cin), jnp.float32)
    x_chk = x_chk.astype(jnp.bfloat16).astype(jnp.float32)       # remove input-quant term
    w_chk = jax.random.normal(k_chk_w, (3, 3, cin, cout), jnp.float32) / math.sqrt(9.0 * cin)
    got = upconv_block(x_chk.astype(jnp.bfloat16),
                       pack_phase_weights(w_chk).astype(jnp.bfloat16),
                       final=False).astype(jnp.float32)
    want = _reference_upconv(x_chk, w_chk, final=False)
    assert got.shape == want.shape, (got.shape, want.shape)
    assert float(jnp.max(jnp.abs(got - want))) < 0.1, float(jnp.max(jnp.abs(got - want)))

    # --- full generator: input_dim=30, num_classes=2 -> (n, 8, 2, 2) start,
    #     hidden_dim=8, im_chan=1, batch=2. Seven x2 upsamples: 2 -> 256 spatial.
    gen = GeneratorPallas(k_params, input_dim=30, num_classes=2,
                          im_chan=1, hidden_dim=8)

    labels = jnp.array([0, 1], dtype=jnp.int32)
    out = gen(labels, k_noise)
    out = jax.block_until_ready(out)

    assert out.shape == (2, 1, 256, 256), out.shape
    assert out.dtype == jnp.float32, out.dtype
    assert bool(jnp.all(jnp.isfinite(out)))
    # final layer is Tanh -> values in [-1, 1]
    assert bool(jnp.max(jnp.abs(out)) <= 1.0 + 1e-6)

    print("KERNEL_OK")
</pallas_src>

<mosaic_0001>
module attributes {stable_mosaic.version = 11 : i64} {
  func.func @upconv_phase_kernel(%arg0: i32, %arg1: i32, %arg2: memref<1x80x48xbf16, #tpu.memory_space<vmem>>, %arg3: memref<3x48x32xbf16, #tpu.memory_space<vmem>>, %arg4: memref<1x64x32xbf16, #tpu.memory_space<vmem>>) attributes {dimension_semantics = [#tpu.dimension_semantics<parallel>, #tpu.dimension_semantics<parallel>], iteration_bounds = array<i64: 1, 1>, scalar_prefetch = 0 : i64, scratch_operands = 0 : i64, tpu.core_type = #tpu.core_type<tc>, window_params = [{transform_indices = @transform_0, window_bounds = array<i64: 1, 80, 48>}, {pipeline_mode = #tpu.pipeline_mode<synchronous>, transform_indices = @transform_1, window_bounds = array<i64: 3, 48, 32>}, {transform_indices = @transform_2, window_bounds = array<i64: 1, 64, 32>}]} {
    %cst = arith.constant 0.000000e+00 : f32
    %0 = vector.broadcast %cst : f32 to vector<64x32xf32>
    %c0 = arith.constant 0 : index
    %c0_0 = arith.constant 0 : index
    %c0_1 = arith.constant 0 : index
    %1 = vector.load %arg2[%c0, %c0_0, %c0_1] : memref<1x80x48xbf16, #tpu.memory_space<vmem>>, vector<1x64x48xbf16>
    %2 = vector.shape_cast %1 : vector<1x64x48xbf16> to vector<64x48xbf16>
    %c0_2 = arith.constant 0 : index
    %c0_3 = arith.constant 0 : index
    %c0_4 = arith.constant 0 : index
    %3 = vector.load %arg3[%c0_2, %c0_3, %c0_4] : memref<3x48x32xbf16, #tpu.memory_space<vmem>>, vector<1x48x32xbf16>
    %4 = vector.shape_cast %3 : vector<1x48x32xbf16> to vector<48x32xbf16>
    %cst_5 = arith.constant dense<0.000000e+00> : vector<64x32xf32>
    %5 = tpu.matmul %2, %4, %cst_5 {dimension_numbers = #tpu.dot_dimension_numbers<[1], [0], [0], [1], [0, 0, 1, 1], [], []>} : vector<64x48xbf16>, vector<48x32xbf16>, vector<64x32xf32> -> vector<64x32xf32>
    %6 = arith.addf %0, %5 : vector<64x32xf32>
    %c0_6 = arith.constant 0 : index
    %c8 = arith.constant 8 : index
    %c0_7 = arith.constant 0 : index
    %7 = vector.load %arg2[%c0_6, %c8, %c0_7] : memref<1x80x48xbf16, #tpu.memory_space<vmem>>, vector<1x64x48xbf16>
    %8 = vector.shape_cast %7 : vector<1x64x48xbf16> to vector<64x48xbf16>
    %c1 = arith.constant 1 : index
    %c0_8 = arith.constant 0 : index
    %c0_9 = arith.constant 0 : index
    %9 = vector.load %arg3[%c1, %c0_8, %c0_9] : memref<3x48x32xbf16, #tpu.memory_space<vmem>>, vector<1x48x32xbf16>
    %10 = vector.shape_cast %9 : vector<1x48x32xbf16> to vector<48x32xbf16>
    %cst_10 = arith.constant dense<0.000000e+00> : vector<64x32xf32>
    %11 = tpu.matmul %8, %10, %cst_10 {dimension_numbers = #tpu.dot_dimension_numbers<[1], [0], [0], [1], [0, 0, 1, 1], [], []>} : vector<64x48xbf16>, vector<48x32xbf16>, vector<64x32xf32> -> vector<64x32xf32>
    %12 = arith.addf %6, %11 : vector<64x32xf32>
    %c0_11 = arith.constant 0 : index
    %c16 = arith.constant 16 : index
    %c0_12 = arith.constant 0 : index
    %13 = vector.load %arg2[%c0_11, %c16, %c0_12] : memref<1x80x48xbf16, #tpu.memory_space<vmem>>, vector<1x64x48xbf16>
    %14 = vector.shape_cast %13 : vector<1x64x48xbf16> to vector<64x48xbf16>
    %c2 = arith.constant 2 : index
    %c0_13 = arith.constant 0 : index
    %c0_14 = arith.constant 0 : index
    %15 = vector.load %arg3[%c2, %c0_13, %c0_14] : memref<3x48x32xbf16, #tpu.memory_space<vmem>>, vector<1x48x32xbf16>
    %16 = vector.shape_cast %15 : vector<1x48x32xbf16> to vector<48x32xbf16>
    %cst_15 = arith.constant dense<0.000000e+00> : vector<64x32xf32>
    %17 = tpu.matmul %14, %16, %cst_15 {dimension_numbers = #tpu.dot_dimension_numbers<[1], [0], [0], [1], [0, 0, 1, 1], [], []>} : vector<64x48xbf16>, vector<48x32xbf16>, vector<64x32xf32> -> vector<64x32xf32>
    %18 = arith.addf %12, %17 : vector<64x32xf32>
    %cst_16 = arith.constant 0.000000e+00 : f32
    %19 = vector.broadcast %cst_16 : f32 to vector<64x32xf32>
    %20 = arith.maximumf %18, %19 : vector<64x32xf32>
    %21 = arith.truncf %20 : vector<64x32xf32> to vector<64x32xbf16>
    %c0_17 = arith.constant 0 : index
    %c0_18 = arith.constant 0 : index
    %c0_19 = arith.constant 0 : index
    %22 = vector.load %arg4[%c0_17, %c0_18, %c0_19] : memref<1x64x32xbf16, #tpu.memory_space<vmem>>, vector<1x64x32xbf16>
    %23 = vector.shape_cast %22 : vector<1x64x32xbf16> to vector<64x32xbf16>
    %24 = vector.shape_cast %21 : vector<64x32xbf16> to vector<1x64x32xbf16>
    tpu.vector_store %arg4[%c0_17, %c0_18, %c0_19], %24 {strides = array<i32>} : memref<1x64x32xbf16, #tpu.memory_space<vmem>>, vector<1x64x32xbf16>,
    return
  }
  func.func @transform_0(%arg0: i32, %arg1: i32) -> (i32, i32, i32) {
    %c0_i32 = arith.constant 0 : i32
    %c0_i32_0 = arith.constant 0 : i32
    %c0_i32_1 = arith.constant 0 : i32
    return %arg0, %c0_i32, %c0_i32_0 : i32, i32, i32
  }
  func.func @transform_1(%arg0: i32, %arg1: i32) -> (i32, i32, i32) {
    %c0_i32 = arith.constant 0 : i32
    %c0_i32_0 = arith.constant 0 : i32
    %c0_i32_1 = arith.constant 0 : i32
    %c0_i32_2 = arith.constant 0 : i32
    return %c0_i32, %c0_i32_0, %c0_i32_1 : i32, i32, i32
  }
  func.func @transform_2(%arg0: i32, %arg1: i32) -> (i32, i32, i32) {
    %c0_i32 = arith.constant 0 : i32
    %c0_i32_0 = arith.constant 0 : i32
    return %arg0, %arg1, %c0_i32 : i32, i32, i32
  }
}

</mosaic_0001>

<bundles_post_ra>
// kernel: tpu_custom_call.1
= control target key start
LH: loop header
LB: loop body
LE: loop exit
PB: predicated region body
PF: predicated region fallthrough
CT: control target
= control target key end

     0   :  { %vm72_vm0 = vcmask 392192   ;;  %vm297_vm1 = vcmask 257024   ;;  %s577_s1 = inlined_call_operand.vmem [shape: bf16[3,48,32], index: 1, kind: input, shape index: {}]   ;;  %s578_s0 = inlined_call_operand.vmem [shape: bf16[1,80,48], index: 0, kind: input, shape index: {}]   ;;  %s579_s2 = inlined_call_operand.vmem [shape: bf16[1,64,32], index: 2, kind: output, shape index: {}]  }
   0x1   :  { %v391_v0 = vld [vmem:[%s577_s1 + $0x28] sm:$0xff]  ;;  %v388_v1 = vld [vmem:[%s577_s1 + $0x10] sm:$0xff]  ;;  %v398_v2 = vld [vmem:[%s577_s1 + $0x40] sm:$0xff] }
   0x2   :  { %90 = vmatpush.bf16.msra.mxu0 %v391_v0  ;;  %438 = vmatpush.bf16.msra.mxu3 %v391_v0  ;;  %v390_v3 = vld [vmem:[%s577_s1 + $0x20] sm:$0xff]  ;;  %v387_v4 = vld [vmem:[%s577_s1 + $0x8] sm:$0xff]  ;;  %v397_v5 = vld [vmem:[%s577_s1 + $0x38] sm:$0xff] }
   0x3   :  { %441 = vmatpush.bf16.msra.mxu1 %v388_v1  ;;  %444 = vmatpush.bf16.msra.mxu2 %v398_v2  ;;  %v389_v6 = vld [vmem:[%s577_s1 + $0x18] sm:$0xff]  ;;  %v386_v7 = vld [vmem:[%s577_s1] sm:$0xff]  ;;  %v396_v8 = vld [vmem:[%s577_s1 + $0x30] sm:$0xff] }
   0x4   :  { %v449_v9 = vld [vmem:[%s578_s0 + $0x4] sm:$0xff]   ;;  %v451_v10 = vld [vmem:[%s578_s0 + $0xc] sm:$0xff]   ;;  %v453_v13 = vld [vmem:[%s578_s0 + $0x14] sm:$0xff]  }
   0x5   :  { %v393_v11 = vld [vmem:[%s578_s0 + $0x10] sm:$0xff]  ;;  %v415_v12 = vld [vmem:[%s578_s0 + $0x8] sm:$0xff]   ;;  %v400_v14 = vld [vmem:[%s578_s0] sm:$0xff]  }
   0x6   :  { %91 = vmatpush.bf16.msra.mxu0 %v390_v3  ;;  %439 = vmatpush.bf16.msra.mxu3 %v390_v3  ;;  %v394_v15 = vld [vmem:[%s578_s0 + $0x18] sm:$0xff]  ;;  %v416_v16 = vld [vmem:[%s578_s0 + $0x10] sm:$0xff]   ;;  %v392_v18 = vld [vmem:[%s578_s0 + $0x8] sm:$0xff] }
   0x7   :  { %442 = vmatpush.bf16.msra.mxu1 %v387_v4  ;;  %445 = vmatpush.bf16.msra.mxu2 %v397_v5  ;;  %v454_v17 = vld [vmem:[%s578_s0 + $0x1c] sm:$0xff] }
   0x8   :  { %v395_v19 = vld [vmem:[%s578_s0 + $0x20] sm:$0xff]  ;;  %v417_v20 = vld [vmem:[%s578_s0 + $0x18] sm:$0xff]  }
   0xa   :  { %92 = vmatpush.bf16.msra.mxu0 %v389_v6  ;;  %440 = vmatpush.bf16.msra.mxu3 %v389_v6 }
   0xb   :  { %443 = vmatpush.bf16.msra.mxu1 %v386_v7  ;;  %446 = vmatpush.bf16.msra.mxu2 %v396_v8 }
   0xd   :  { %328 = vmatmul.msk.bf16.vlgmr.msra.gmra.mxu0 %vm72_vm0, %v449_v9  ;;  %329 = vmatmul.msk.bf16.vlgmr.msra.gmra.mxu3 %vm72_vm0, %v451_v10 }
   0xe   :  { %155 = vmatpush.bf16.msrb.mxu0 %v388_v1  ;;  %345 = vmatmul.msk.bf16.vlgmr.msra.gmra.mxu1 %vm72_vm0, %v415_v12 }
   0xf   :  { %383 = vmatmul.msk.bf16.vlgmr.msra.gmra.mxu2 %vm72_vm0, %v393_v11 }
  0x12   :  { %156 = vmatpush.bf16.msrb.mxu0 %v387_v4 }
  0x16   :  { %157 = vmatpush.bf16.msrb.mxu0 %v386_v7 }
  0x1a   :  { %249 = vmatpush.bf16.msra.mxu0 %v398_v2 }
  0x1d   :  { %330 = vmatmul.msk.bf16.gmra.mxu3 %vm72_vm0, %v453_v13  ;;  %344 = vmatmul.msk.bf16.vlgmr.msrb.gmra.mxu0 %vm72_vm0, %v400_v14 }
  0x1e   :  { %250 = vmatpush.bf16.msra.mxu0 %v397_v5  ;;  %346 = vmatmul.msk.bf16.gmra.mxu1 %vm72_vm0, %v416_v16 }
  0x1f   :  { %384 = vmatmul.msk.bf16.gmra.mxu2 %vm72_vm0, %v394_v15 }
  0x22   :  { %251 = vmatpush.bf16.msra.mxu0 %v396_v8 }
  0x2d   :  { %331 = vmatmul.msk.bf16.gmra.mxu3 %vm72_vm0, %v454_v17  ;;  %382 = vmatmul.msk.bf16.vlgmr.msra.gmra.mxu0 %vm72_vm0, %v392_v18 }
  0x2e   :  { %347 = vmatmul.msk.bf16.gmra.mxu1 %vm72_vm0, %v417_v20 }
  0x2f   :  { %385 = vmatmul.msk.bf16.gmra.mxu2 %vm72_vm0, %v395_v19 }
  0x8a   :  { %v94_v21 = vpop.f32.mrf.mxu0 }
  0x8b   :  { %v164_v22 = vpop.f32.mrf.mxu1 }
  0x90   :  { %v99_v23 = vpop.f32.mrf.mxu3 }
  0x91   :  { %v165_v24 = vadd.f32 %v164_v22, %v99_v23 }
  0x92   :  { %v258_v25 = vpop.f32.mrf.mxu2  ;;  %v96_v26 = vpop.f32.mrf.mxu0 }
  0x93   :  { %v275_v27 = vadd.f32 %v258_v25, %v165_v24  ;;  %v166_v28 = vpop.f32.mrf.mxu1 }
  0x95   :  { %v283_v29 = vmax.f32 %v275_v27, 0.0 }
  0x97   :  { %v291_v30 = vpack.c.bf16 %v283_v29, %v283_v29 }
  0x98   :  { %v101_v31 = vpop.f32.mrf.mxu3 }
  0x99   :  { %300 = vst.msk [vmem:[%s579_s2 + $0x8] sm:$0xf] %vm297_vm1, %v291_v30  ;;  %v167_v32 = vadd.f32 %v166_v28, %v101_v31 }
  0x9a   :  { %v260_v33 = vpop.f32.mrf.mxu2  ;;  %v159_v34 = vpop.f32.mrf.mxu0 }
  0x9b   :  { %v276_v35 = vadd.f32 %v260_v33, %v167_v32  ;;  %v169_v36 = vpop.f32.mrf.mxu1  ;;  %v160_v48 = vadd.f32 %v159_v34, %v94_v21 }
  0x9d   :  { %v284_v37 = vmax.f32 %v276_v35, 0.0 }
  0x9f   :  { %v292_v38 = vpack.c.bf16 %v284_v37, %v284_v37 }
  0xa0   :  { %v104_v39 = vpop.f32.mrf.mxu3 }
  0xa1   :  { %301 = vst.msk [vmem:[%s579_s2 + $0xc] sm:$0xf] %vm297_vm1, %v292_v38  ;;  %v170_v40 = vadd.f32 %v169_v36, %v104_v39 }
  0xa2   :  { %v263_v41 = vpop.f32.mrf.mxu2  ;;  %v161_v42 = vpop.f32.mrf.mxu0 }
  0xa3   :  { %v277_v43 = vadd.f32 %v263_v41, %v170_v40  ;;  %v171_v44 = vpop.f32.mrf.mxu1  ;;  %v162_v60 = vadd.f32 %v161_v42, %v96_v26 }
  0xa5   :  { %v285_v45 = vmax.f32 %v277_v43, 0.0 }
  0xa7   :  { %v293_v46 = vpack.c.bf16 %v285_v45, %v285_v45 }
  0xa8   :  { %v106_v47 = vpop.f32.mrf.mxu3 }
  0xa9   :  { %302 = vst.msk [vmem:[%s579_s2 + $0x10] sm:$0xf] %vm297_vm1, %v293_v46  ;;  %v172_v49 = vadd.f32 %v171_v44, %v106_v47 }
  0xaa   :  { %v265_v50 = vpop.f32.mrf.mxu2  ;;  %v253_v51 = vpop.f32.mrf.mxu0 }
  0xab   :  { %v278_v52 = vadd.f32 %v265_v50, %v172_v49  ;;  %v273_v53 = vadd.f32 %v253_v51, %v160_v48  ;;  %v174_v56 = vpop.f32.mrf.mxu1 }
  0xad   :  { %v286_v54 = vmax.f32 %v278_v52, 0.0  ;;  %v281_v55 = vmax.f32 %v273_v53, 0.0 }
  0xaf   :  { %v294_v57 = vpack.c.bf16 %v286_v54, %v286_v54  ;;  %v289_v58 = vpack.c.bf16 %v281_v55, %v281_v55 }
  0xb0   :  { %v109_v59 = vpop.f32.mrf.mxu3 }
  0xb1   :  { %303 = vst.msk [vmem:[%s579_s2 + $0x14] sm:$0xf] %vm297_vm1, %v294_v57  ;;  %v175_v61 = vadd.f32 %v174_v56, %v109_v59 }
  0xb2   :  { %v268_v62 = vpop.f32.mrf.mxu2  ;;  %298 = vst.msk [vmem:[%s579_s2] sm:$0xf] %vm297_vm1, %v289_v58  ;;  %v255_v63 = vpop.f32.mrf.mxu0 }
  0xb3   :  { %v279_v0 = vadd.f32 %v268_v62, %v175_v61  ;;  %v274_v1 = vadd.f32 %v255_v63, %v162_v60  ;;  %v176_v6 = vpop.f32.mrf.mxu1 }
  0xb5   :  { %v287_v2 = vmax.f32 %v279_v0, 0.0  ;;  %v282_v3 = vmax.f32 %v274_v1, 0.0 }
  0xb7   :  { %v295_v4 = vpack.c.bf16 %v287_v2, %v287_v2  ;;  %v290_v5 = vpack.c.bf16 %v282_v3, %v282_v3 }
  0xb8   :  { %v111_v7 = vpop.f32.mrf.mxu3 }
  0xb9   :  { %304 = vst.msk [vmem:[%s579_s2 + $0x18] sm:$0xf] %vm297_vm1, %v295_v4  ;;  %v177_v8 = vadd.f32 %v176_v6, %v111_v7 }
  0xba   :  { %299 = vst.msk [vmem:[%s579_s2 + $0x4] sm:$0xf] %vm297_vm1, %v290_v5  ;;  %v270_v9 = vpop.f32.mrf.mxu2 }
  0xbb   :  { %v280_v10 = vadd.f32 %v270_v9, %v177_v8 }
  0xbd   :  { %v288_v11 = vmax.f32 %v280_v10, 0.0 }
  0xbf   :  { %v296_v12 = vpack.c.bf16 %v288_v11, %v288_v11 }
  0xc1   :  { %305 = vst.msk [vmem:[%s579_s2 + $0x1c] sm:$0xf] %vm297_vm1, %v296_v12 }

</bundles_post_ra>
